<compile_context>
chip_gen: v5e
topology: v5e:2x2
jax: 0.10.0
libtpu: 0.0.40
codegen_flags: <defaults>
</compile_context>

<pallas_src>
import numpy as np

import jax
import jax.numpy as jnp
from jax.experimental import pallas as pl
from jax.experimental.pallas import tpu as pltpu


def _vspec():
    # whole-array-in-VMEM spec (no grid; all operands are tiny here)
    return pl.BlockSpec(memory_space=pltpu.MemorySpace.VMEM)


# Haar analysis / synthesis butterflies acting on the polyphase index.
# Polyphase row ordering used everywhere below (row-parity major, col-parity):
#   q=0 -> (even row, even col) = a    q=1 -> (even row, odd col) = c
#   q=2 -> (odd  row, even col) = b    q=3 -> (odd  row, odd col) = d
# Band ordering is (LL, HL, LH, HH) -- same channel-concat order as torch DWT.
_B_FWD = 0.5 * np.array(
    [[ 1.,  1.,  1.,  1.],    # LL =  .5*( a + b + c + d)
     [-1.,  1., -1.,  1.],    # HL =  .5*(-a - b + c + d)
     [-1., -1.,  1.,  1.],    # LH =  .5*(-a + b - c + d)
     [ 1., -1., -1.,  1.]],   # HH =  .5*( a - b - c + d)
    dtype=np.float32)         # columns in (a, c, b, d) polyphase order
_B_INV = _B_FWD.T             # orthogonal -> synthesis = transpose


# ----------------------------------------------------------------------------
# Fused forward kernel
# ----------------------------------------------------------------------------
def _stego_forward_kernel(
    text_ref,      # (1, T)       text bits
    host_ref,      # (4C, S)      host-image polyphase: rows (r, p, ch), cols (n, hh, ww)
    wt_ref,        # (4C*T, S)    text-embedding weight, block i = T rows for poly-row i
    bt_ref,        # (4C, S)      text-embedding bias in the same polyphase layout
    dwt_ref,       # (4C, 4C)     Haar analysis  (polyphase -> bands), kron(B, I_C)
    idwt_ref,      # (4C, 4C)     Haar synthesis (bands -> polyphase)
    wphi_ref,      # (4C, 4C)     phi subnet weight, transposed (wphi.T)
    bphi_ref,      # (4C, 1)
    wst_ref,       # (8C, 4C)     fused [rho ; eta] weight, transposed
    bst_ref,       # (8C, 1)
    cont_ref,      # out: (4C, S) container-image polyphase, rows (r, p, ch)
    noise_ref,     # out: (4C, S) freq-noise (second coupling output; unused by forward)
    sec_ref,       # scratch: (4C, S) secret-image polyphase
):
    C4, S = host_ref.shape
    T = text_ref.shape[1]
    text = text_ref[...]                                        # (1, T)

    # --- TextEmbedding: one (1,T)@(T,S) MXU pass per polyphase/channel row;
    #     result lands directly in the secret polyphase layout in VMEM.
    #     (static unrolled loop; static single-sublane stores)
    for i in range(C4):
        w_i = wt_ref[pl.ds(i * T, T), :]                        # (T, S)
        sec_ref[pl.ds(i, 1), :] = jnp.dot(
            text, w_i, preferred_element_type=jnp.float32)      # (1, S)
    sec_poly = sec_ref[...] + bt_ref[...]                       # (4C, S)

    # --- Haar DWT of host and secret (channelwise orthogonal matmul) ---
    x1 = jnp.dot(dwt_ref[...], host_ref[...],
                 preferred_element_type=jnp.float32)            # (4C, S) host freq
    x2 = jnp.dot(dwt_ref[...], sec_poly,
                 preferred_element_type=jnp.float32)            # (4C, S) secret freq

    # --- ImageEmbedding: affine coupling in (channels, spatial) layout ---
    #   y1 = x1 + phi(x2)
    #   [s ; t] = fused rho/eta(y1)            (single MXU pass, 2x wider)
    #   y2 = x2 * exp(0.1 * tanh(s)) + t       (freq-noise; discarded by forward)
    y1 = (x1
          + jnp.dot(wphi_ref[...], x2, preferred_element_type=jnp.float32)
          + bphi_ref[...])
    st = jnp.dot(wst_ref[...], y1, preferred_element_type=jnp.float32) + bst_ref[...]
    s = st[0:C4, :]
    t = st[C4:2 * C4, :]
    y2 = x2 * jnp.exp(0.1 * jnp.tanh(s)) + t

    # --- inverse Haar DWT of the container back to polyphase layout ---
    cont_ref[...] = jnp.dot(idwt_ref[...], y1, preferred_element_type=jnp.float32)
    noise_ref[...] = y2


# ----------------------------------------------------------------------------
# Layout-only host-side preparation (pure reshapes / transposes / concats)
# ----------------------------------------------------------------------------
def _prepare_inputs(text_bits, host_image, params):
    N, C, H, W = host_image.shape
    assert N == 1, "forward() pairs the host with a single (unsqueezed) secret image"
    assert H % 2 == 0 and W % 2 == 0
    Hh, Wh = H // 2, W // 2
    S = N * Hh * Wh
    C4 = 4 * C
    T = text_bits.shape[-1]

    text = text_bits.reshape(1, T).astype(jnp.float32)

    # host image NCHW -> polyphase slab (4C, S); rows (row-parity, col-parity, ch)
    host_poly = (
        host_image.reshape(N, C, Hh, 2, Wh, 2)
        .transpose(3, 5, 1, 0, 2, 4)
        .reshape(C4, S)
    )

    # text-embedding weight/bias permuted into the same polyphase layout;
    # weight stacked as (4C*T, S) so the kernel slices one (T, S) block per row.
    w_stack = (
        params["text_w"].reshape(T, C, Hh, 2, Wh, 2)
        .transpose(3, 5, 1, 0, 2, 4)
        .reshape(C4 * T, Hh * Wh)
    )
    b_poly = (
        params["text_b"].reshape(C, Hh, 2, Wh, 2)
        .transpose(2, 4, 0, 1, 3)
        .reshape(C4, Hh * Wh)
    )

    # Haar analysis / synthesis as channelwise orthogonal matrices.
    dwt_mat = jnp.asarray(np.kron(_B_FWD, np.eye(C, dtype=np.float32)))
    idwt_mat = jnp.asarray(np.kron(_B_INV, np.eye(C, dtype=np.float32)))

    # coupling subnets transposed for the (channels, spatial) layout;
    # rho and eta fused into a single (8C, 4C) weight / (8C, 1) bias.
    wphi_t = params["wphi"].T
    bphi_c = params["bphi"].reshape(C4, 1)
    wst_t = jnp.concatenate([params["wrho"].T, params["weta"].T], axis=0)
    bst_c = jnp.concatenate(
        [params["brho"].reshape(C4, 1), params["beta"].reshape(C4, 1)], axis=0)

    return (text, host_poly, w_stack, b_poly, dwt_mat, idwt_mat,
            wphi_t, bphi_c, wst_t, bst_c)


def our_model_forward(text_bits, host_image, params):
    N, C, H, W = host_image.shape
    Hh, Wh = H // 2, W // 2
    S = N * Hh * Wh
    C4 = 4 * C

    inputs = _prepare_inputs(text_bits, host_image, params)

    out_shape = (
        jax.ShapeDtypeStruct((C4, S), jnp.float32),   # container polyphase
        jax.ShapeDtypeStruct((C4, S), jnp.float32),   # freq-noise (discarded)
    )
    cont_poly, _freq_noise = pl.pallas_call(
        _stego_forward_kernel,
        out_shape=out_shape,
        in_specs=[_vspec()] * 10,
        out_specs=(_vspec(), _vspec()),
        scratch_shapes=[pltpu.VMEM((C4, S), jnp.float32)],
    )(*inputs)

    # polyphase -> NCHW interleave: a single layout-only transpose+reshape
    # (no strided dynamic-update-slice scatters).
    container = (
        cont_poly.reshape(2, 2, C, N, Hh, Wh)
        .transpose(3, 2, 4, 0, 5, 1)
        .reshape(N, C, H, W)
    )
    return container


# ----------------------------------------------------------------------------
# Pure-JAX reference (sanity check only)
# ----------------------------------------------------------------------------
def _ref_forward(text_bits, host_image, params, C, H, W):
    def dwt(x):
        a = x[:, :, 0::2, 0::2] * 0.5
        b = x[:, :, 1::2, 0::2] * 0.5
        c = x[:, :, 0::2, 1::2] * 0.5
        d = x[:, :, 1::2, 1::2] * 0.5
        return jnp.concatenate([a + b + c + d, -a - b + c + d,
                                -a + b - c + d, a - b - c + d], axis=1)

    def iwt(x):
        N, C4, Hh, Wh = x.shape
        Cc = C4 // 4
        ll, hl, lh, hh = x[:, :Cc], x[:, Cc:2 * Cc], x[:, 2 * Cc:3 * Cc], x[:, 3 * Cc:]
        a = 0.5 * (ll - hl - lh + hh)
        b = 0.5 * (ll - hl + lh - hh)
        c = 0.5 * (ll + hl - lh - hh)
        d = 0.5 * (ll + hl + lh + hh)
        out = jnp.zeros((N, Cc, 2 * Hh, 2 * Wh), jnp.float32)
        out = out.at[:, :, 0::2, 0::2].set(a).at[:, :, 1::2, 0::2].set(b)
        out = out.at[:, :, 0::2, 1::2].set(c).at[:, :, 1::2, 1::2].set(d)
        return out

    fh = dwt(host_image)
    secret = (text_bits.reshape(1, -1) @ params["text_w"] + params["text_b"]).reshape(1, C, H, W)
    fs = dwt(secret)
    N, C4, Hh, Wh = fh.shape
    to2d = lambda t: t.transpose(0, 2, 3, 1).reshape(N * Hh * Wh, C4)
    to4d = lambda t: t.reshape(N, Hh, Wh, C4).transpose(0, 3, 1, 2)
    x1, x2 = to2d(fh), to2d(fs)
    y1 = x1 + x2 @ params["wphi"] + params["bphi"]
    return iwt(to4d(y1))


# ----------------------------------------------------------------------------
# Deterministic parameter init
# ----------------------------------------------------------------------------
def init_params(key, text_len, C, H, W):
    C4 = 4 * C
    ks = jax.random.split(key, 4)
    scale = 0.02
    return {
        "text_w": scale * jax.random.normal(ks[0], (text_len, C * H * W), jnp.float32),
        "text_b": jnp.zeros((1, C * H * W), jnp.float32),
        "wphi": scale * jax.random.normal(ks[1], (C4, C4), jnp.float32),
        "bphi": jnp.zeros((1, C4), jnp.float32),
        "wrho": scale * jax.random.normal(ks[2], (C4, C4), jnp.float32),
        "brho": jnp.zeros((1, C4), jnp.float32),
        "weta": scale * jax.random.normal(ks[3], (C4, C4), jnp.float32),
        "beta": jnp.zeros((1, C4), jnp.float32),
    }


if __name__ == "__main__":
    N, C, H, W = 1, 4, 16, 16
    TEXT_LEN = 64

    key = jax.random.PRNGKey(0)
    k_bits, k_img, k_params = jax.random.split(key, 3)

    text_bits = jax.random.bernoulli(k_bits, 0.5, (TEXT_LEN,)).astype(jnp.float32)
    host_image = jax.random.normal(k_img, (N, C, H, W), jnp.float32)
    params = init_params(k_params, TEXT_LEN, C, H, W)

    fwd = jax.jit(our_model_forward)
    container = jax.block_until_ready(fwd(text_bits, host_image, params))

    ref = _ref_forward(text_bits, host_image, params, C, H, W)
    assert container.shape == (N, C, H, W), container.shape
    err = float(jnp.max(jnp.abs(container - ref)))
    assert jnp.allclose(container, ref, atol=1e-2, rtol=1e-2), err
    print("KERNEL_OK")
</pallas_src>

<mosaic_0001>
module attributes {stable_mosaic.version = 11 : i64} {
  func.func @_stego_forward_kernel(%arg0: memref<1x64xf32, #tpu.memory_space<vmem>>, %arg1: memref<16x64xf32, #tpu.memory_space<vmem>>, %arg2: memref<1024x64xf32, #tpu.memory_space<vmem>>, %arg3: memref<16x64xf32, #tpu.memory_space<vmem>>, %arg4: memref<16x16xf32, #tpu.memory_space<vmem>>, %arg5: memref<16x16xf32, #tpu.memory_space<vmem>>, %arg6: memref<16x16xf32, #tpu.memory_space<vmem>>, %arg7: memref<16x1xf32, #tpu.memory_space<vmem>>, %arg8: memref<32x16xf32, #tpu.memory_space<vmem>>, %arg9: memref<32x1xf32, #tpu.memory_space<vmem>>, %arg10: memref<16x64xf32, #tpu.memory_space<vmem>>, %arg11: memref<16x64xf32, #tpu.memory_space<vmem>>, %arg12: memref<16x64xf32, #tpu.memory_space<vmem>>) attributes {dimension_semantics = [], scalar_prefetch = 0 : i64, scratch_operands = 1 : i64, tpu.core_type = #tpu.core_type<tc>} {
    %c0 = arith.constant 0 : index
    %c0_0 = arith.constant 0 : index
    %0 = vector.load %arg0[%c0, %c0_0] : memref<1x64xf32, #tpu.memory_space<vmem>>, vector<1x64xf32>
    %c0_1 = arith.constant 0 : index
    %c0_2 = arith.constant 0 : index
    %1 = vector.load %arg2[%c0_1, %c0_2] : memref<1024x64xf32, #tpu.memory_space<vmem>>, vector<64x64xf32>
    %cst = arith.constant dense<0.000000e+00> : vector<1x64xf32>
    %2 = tpu.matmul %0, %1, %cst {dimension_numbers = #tpu.dot_dimension_numbers<[1], [0], [0], [1], [0, 0, 1, 1], [], []>} : vector<1x64xf32>, vector<64x64xf32>, vector<1x64xf32> -> vector<1x64xf32>
    %c0_3 = arith.constant 0 : index
    %c0_4 = arith.constant 0 : index
    %3 = vector.load %arg12[%c0_3, %c0_4] : memref<16x64xf32, #tpu.memory_space<vmem>>, vector<1x64xf32>
    tpu.vector_store %arg12[%c0_3, %c0_4], %2 {strides = array<i32>} : memref<16x64xf32, #tpu.memory_space<vmem>>, vector<1x64xf32>,
    %c64 = arith.constant 64 : index
    %c0_5 = arith.constant 0 : index
    %4 = vector.load %arg2[%c64, %c0_5] : memref<1024x64xf32, #tpu.memory_space<vmem>>, vector<64x64xf32>
    %cst_6 = arith.constant dense<0.000000e+00> : vector<1x64xf32>
    %5 = tpu.matmul %0, %4, %cst_6 {dimension_numbers = #tpu.dot_dimension_numbers<[1], [0], [0], [1], [0, 0, 1, 1], [], []>} : vector<1x64xf32>, vector<64x64xf32>, vector<1x64xf32> -> vector<1x64xf32>
    %c1 = arith.constant 1 : index
    %c0_7 = arith.constant 0 : index
    %6 = vector.load %arg12[%c1, %c0_7] : memref<16x64xf32, #tpu.memory_space<vmem>>, vector<1x64xf32>
    tpu.vector_store %arg12[%c1, %c0_7], %5 {strides = array<i32>} : memref<16x64xf32, #tpu.memory_space<vmem>>, vector<1x64xf32>,
    %c128 = arith.constant 128 : index
    %c0_8 = arith.constant 0 : index
    %7 = vector.load %arg2[%c128, %c0_8] : memref<1024x64xf32, #tpu.memory_space<vmem>>, vector<64x64xf32>
    %cst_9 = arith.constant dense<0.000000e+00> : vector<1x64xf32>
    %8 = tpu.matmul %0, %7, %cst_9 {dimension_numbers = #tpu.dot_dimension_numbers<[1], [0], [0], [1], [0, 0, 1, 1], [], []>} : vector<1x64xf32>, vector<64x64xf32>, vector<1x64xf32> -> vector<1x64xf32>
    %c2 = arith.constant 2 : index
    %c0_10 = arith.constant 0 : index
    %9 = vector.load %arg12[%c2, %c0_10] : memref<16x64xf32, #tpu.memory_space<vmem>>, vector<1x64xf32>
    tpu.vector_store %arg12[%c2, %c0_10], %8 {strides = array<i32>} : memref<16x64xf32, #tpu.memory_space<vmem>>, vector<1x64xf32>,
    %c192 = arith.constant 192 : index
    %c0_11 = arith.constant 0 : index
    %10 = vector.load %arg2[%c192, %c0_11] : memref<1024x64xf32, #tpu.memory_space<vmem>>, vector<64x64xf32>
    %cst_12 = arith.constant dense<0.000000e+00> : vector<1x64xf32>
    %11 = tpu.matmul %0, %10, %cst_12 {dimension_numbers = #tpu.dot_dimension_numbers<[1], [0], [0], [1], [0, 0, 1, 1], [], []>} : vector<1x64xf32>, vector<64x64xf32>, vector<1x64xf32> -> vector<1x64xf32>
    %c3 = arith.constant 3 : index
    %c0_13 = arith.constant 0 : index
    %12 = vector.load %arg12[%c3, %c0_13] : memref<16x64xf32, #tpu.memory_space<vmem>>, vector<1x64xf32>
    tpu.vector_store %arg12[%c3, %c0_13], %11 {strides = array<i32>} : memref<16x64xf32, #tpu.memory_space<vmem>>, vector<1x64xf32>,
    %c256 = arith.constant 256 : index
    %c0_14 = arith.constant 0 : index
    %13 = vector.load %arg2[%c256, %c0_14] : memref<1024x64xf32, #tpu.memory_space<vmem>>, vector<64x64xf32>
    %cst_15 = arith.constant dense<0.000000e+00> : vector<1x64xf32>
    %14 = tpu.matmul %0, %13, %cst_15 {dimension_numbers = #tpu.dot_dimension_numbers<[1], [0], [0], [1], [0, 0, 1, 1], [], []>} : vector<1x64xf32>, vector<64x64xf32>, vector<1x64xf32> -> vector<1x64xf32>
    %c4 = arith.constant 4 : index
    %c0_16 = arith.constant 0 : index
    %15 = vector.load %arg12[%c4, %c0_16] : memref<16x64xf32, #tpu.memory_space<vmem>>, vector<1x64xf32>
    tpu.vector_store %arg12[%c4, %c0_16], %14 {strides = array<i32>} : memref<16x64xf32, #tpu.memory_space<vmem>>, vector<1x64xf32>,
    %c320 = arith.constant 320 : index
    %c0_17 = arith.constant 0 : index
    %16 = vector.load %arg2[%c320, %c0_17] : memref<1024x64xf32, #tpu.memory_space<vmem>>, vector<64x64xf32>
    %cst_18 = arith.constant dense<0.000000e+00> : vector<1x64xf32>
    %17 = tpu.matmul %0, %16, %cst_18 {dimension_numbers = #tpu.dot_dimension_numbers<[1], [0], [0], [1], [0, 0, 1, 1], [], []>} : vector<1x64xf32>, vector<64x64xf32>, vector<1x64xf32> -> vector<1x64xf32>
    %c5 = arith.constant 5 : index
    %c0_19 = arith.constant 0 : index
    %18 = vector.load %arg12[%c5, %c0_19] : memref<16x64xf32, #tpu.memory_space<vmem>>, vector<1x64xf32>
    tpu.vector_store %arg12[%c5, %c0_19], %17 {strides = array<i32>} : memref<16x64xf32, #tpu.memory_space<vmem>>, vector<1x64xf32>,
    %c384 = arith.constant 384 : index
    %c0_20 = arith.constant 0 : index
    %19 = vector.load %arg2[%c384, %c0_20] : memref<1024x64xf32, #tpu.memory_space<vmem>>, vector<64x64xf32>
    %cst_21 = arith.constant dense<0.000000e+00> : vector<1x64xf32>
    %20 = tpu.matmul %0, %19, %cst_21 {dimension_numbers = #tpu.dot_dimension_numbers<[1], [0], [0], [1], [0, 0, 1, 1], [], []>} : vector<1x64xf32>, vector<64x64xf32>, vector<1x64xf32> -> vector<1x64xf32>
    %c6 = arith.constant 6 : index
    %c0_22 = arith.constant 0 : index
    %21 = vector.load %arg12[%c6, %c0_22] : memref<16x64xf32, #tpu.memory_space<vmem>>, vector<1x64xf32>
    tpu.vector_store %arg12[%c6, %c0_22], %20 {strides = array<i32>} : memref<16x64xf32, #tpu.memory_space<vmem>>, vector<1x64xf32>,
    %c448 = arith.constant 448 : index
    %c0_23 = arith.constant 0 : index
    %22 = vector.load %arg2[%c448, %c0_23] : memref<1024x64xf32, #tpu.memory_space<vmem>>, vector<64x64xf32>
    %cst_24 = arith.constant dense<0.000000e+00> : vector<1x64xf32>
    %23 = tpu.matmul %0, %22, %cst_24 {dimension_numbers = #tpu.dot_dimension_numbers<[1], [0], [0], [1], [0, 0, 1, 1], [], []>} : vector<1x64xf32>, vector<64x64xf32>, vector<1x64xf32> -> vector<1x64xf32>
    %c7 = arith.constant 7 : index
    %c0_25 = arith.constant 0 : index
    %24 = vector.load %arg12[%c7, %c0_25] : memref<16x64xf32, #tpu.memory_space<vmem>>, vector<1x64xf32>
    tpu.vector_store %arg12[%c7, %c0_25], %23 {strides = array<i32>} : memref<16x64xf32, #tpu.memory_space<vmem>>, vector<1x64xf32>,
    %c512 = arith.constant 512 : index
    %c0_26 = arith.constant 0 : index
    %25 = vector.load %arg2[%c512, %c0_26] : memref<1024x64xf32, #tpu.memory_space<vmem>>, vector<64x64xf32>
    %cst_27 = arith.constant dense<0.000000e+00> : vector<1x64xf32>
    %26 = tpu.matmul %0, %25, %cst_27 {dimension_numbers = #tpu.dot_dimension_numbers<[1], [0], [0], [1], [0, 0, 1, 1], [], []>} : vector<1x64xf32>, vector<64x64xf32>, vector<1x64xf32> -> vector<1x64xf32>
    %c8 = arith.constant 8 : index
    %c0_28 = arith.constant 0 : index
    %27 = vector.load %arg12[%c8, %c0_28] : memref<16x64xf32, #tpu.memory_space<vmem>>, vector<1x64xf32>
    tpu.vector_store %arg12[%c8, %c0_28], %26 {strides = array<i32>} : memref<16x64xf32, #tpu.memory_space<vmem>>, vector<1x64xf32>,
    %c576 = arith.constant 576 : index
    %c0_29 = arith.constant 0 : index
    %28 = vector.load %arg2[%c576, %c0_29] : memref<1024x64xf32, #tpu.memory_space<vmem>>, vector<64x64xf32>
    %cst_30 = arith.constant dense<0.000000e+00> : vector<1x64xf32>
    %29 = tpu.matmul %0, %28, %cst_30 {dimension_numbers = #tpu.dot_dimension_numbers<[1], [0], [0], [1], [0, 0, 1, 1], [], []>} : vector<1x64xf32>, vector<64x64xf32>, vector<1x64xf32> -> vector<1x64xf32>
    %c9 = arith.constant 9 : index
    %c0_31 = arith.constant 0 : index
    %30 = vector.load %arg12[%c9, %c0_31] : memref<16x64xf32, #tpu.memory_space<vmem>>, vector<1x64xf32>
    tpu.vector_store %arg12[%c9, %c0_31], %29 {strides = array<i32>} : memref<16x64xf32, #tpu.memory_space<vmem>>, vector<1x64xf32>,
    %c640 = arith.constant 640 : index
    %c0_32 = arith.constant 0 : index
    %31 = vector.load %arg2[%c640, %c0_32] : memref<1024x64xf32, #tpu.memory_space<vmem>>, vector<64x64xf32>
    %cst_33 = arith.constant dense<0.000000e+00> : vector<1x64xf32>
    %32 = tpu.matmul %0, %31, %cst_33 {dimension_numbers = #tpu.dot_dimension_numbers<[1], [0], [0], [1], [0, 0, 1, 1], [], []>} : vector<1x64xf32>, vector<64x64xf32>, vector<1x64xf32> -> vector<1x64xf32>
    %c10 = arith.constant 10 : index
    %c0_34 = arith.constant 0 : index
    %33 = vector.load %arg12[%c10, %c0_34] : memref<16x64xf32, #tpu.memory_space<vmem>>, vector<1x64xf32>
    tpu.vector_store %arg12[%c10, %c0_34], %32 {strides = array<i32>} : memref<16x64xf32, #tpu.memory_space<vmem>>, vector<1x64xf32>,
    %c704 = arith.constant 704 : index
    %c0_35 = arith.constant 0 : index
    %34 = vector.load %arg2[%c704, %c0_35] : memref<1024x64xf32, #tpu.memory_space<vmem>>, vector<64x64xf32>
    %cst_36 = arith.constant dense<0.000000e+00> : vector<1x64xf32>
    %35 = tpu.matmul %0, %34, %cst_36 {dimension_numbers = #tpu.dot_dimension_numbers<[1], [0], [0], [1], [0, 0, 1, 1], [], []>} : vector<1x64xf32>, vector<64x64xf32>, vector<1x64xf32> -> vector<1x64xf32>
    %c11 = arith.constant 11 : index
    %c0_37 = arith.constant 0 : index
    %36 = vector.load %arg12[%c11, %c0_37] : memref<16x64xf32, #tpu.memory_space<vmem>>, vector<1x64xf32>
    tpu.vector_store %arg12[%c11, %c0_37], %35 {strides = array<i32>} : memref<16x64xf32, #tpu.memory_space<vmem>>, vector<1x64xf32>,
    %c768 = arith.constant 768 : index
    %c0_38 = arith.constant 0 : index
    %37 = vector.load %arg2[%c768, %c0_38] : memref<1024x64xf32, #tpu.memory_space<vmem>>, vector<64x64xf32>
    %cst_39 = arith.constant dense<0.000000e+00> : vector<1x64xf32>
    %38 = tpu.matmul %0, %37, %cst_39 {dimension_numbers = #tpu.dot_dimension_numbers<[1], [0], [0], [1], [0, 0, 1, 1], [], []>} : vector<1x64xf32>, vector<64x64xf32>, vector<1x64xf32> -> vector<1x64xf32>
    %c12 = arith.constant 12 : index
    %c0_40 = arith.constant 0 : index
    %39 = vector.load %arg12[%c12, %c0_40] : memref<16x64xf32, #tpu.memory_space<vmem>>, vector<1x64xf32>
    tpu.vector_store %arg12[%c12, %c0_40], %38 {strides = array<i32>} : memref<16x64xf32, #tpu.memory_space<vmem>>, vector<1x64xf32>,
    %c832 = arith.constant 832 : index
    %c0_41 = arith.constant 0 : index
    %40 = vector.load %arg2[%c832, %c0_41] : memref<1024x64xf32, #tpu.memory_space<vmem>>, vector<64x64xf32>
    %cst_42 = arith.constant dense<0.000000e+00> : vector<1x64xf32>
    %41 = tpu.matmul %0, %40, %cst_42 {dimension_numbers = #tpu.dot_dimension_numbers<[1], [0], [0], [1], [0, 0, 1, 1], [], []>} : vector<1x64xf32>, vector<64x64xf32>, vector<1x64xf32> -> vector<1x64xf32>
    %c13 = arith.constant 13 : index
    %c0_43 = arith.constant 0 : index
    %42 = vector.load %arg12[%c13, %c0_43] : memref<16x64xf32, #tpu.memory_space<vmem>>, vector<1x64xf32>
    tpu.vector_store %arg12[%c13, %c0_43], %41 {strides = array<i32>} : memref<16x64xf32, #tpu.memory_space<vmem>>, vector<1x64xf32>,
    %c896 = arith.constant 896 : index
    %c0_44 = arith.constant 0 : index
    %43 = vector.load %arg2[%c896, %c0_44] : memref<1024x64xf32, #tpu.memory_space<vmem>>, vector<64x64xf32>
    %cst_45 = arith.constant dense<0.000000e+00> : vector<1x64xf32>
    %44 = tpu.matmul %0, %43, %cst_45 {dimension_numbers = #tpu.dot_dimension_numbers<[1], [0], [0], [1], [0, 0, 1, 1], [], []>} : vector<1x64xf32>, vector<64x64xf32>, vector<1x64xf32> -> vector<1x64xf32>
    %c14 = arith.constant 14 : index
    %c0_46 = arith.constant 0 : index
    %45 = vector.load %arg12[%c14, %c0_46] : memref<16x64xf32, #tpu.memory_space<vmem>>, vector<1x64xf32>
    tpu.vector_store %arg12[%c14, %c0_46], %44 {strides = array<i32>} : memref<16x64xf32, #tpu.memory_space<vmem>>, vector<1x64xf32>,
    %c960 = arith.constant 960 : index
    %c0_47 = arith.constant 0 : index
    %46 = vector.load %arg2[%c960, %c0_47] : memref<1024x64xf32, #tpu.memory_space<vmem>>, vector<64x64xf32>
    %cst_48 = arith.constant dense<0.000000e+00> : vector<1x64xf32>
    %47 = tpu.matmul %0, %46, %cst_48 {dimension_numbers = #tpu.dot_dimension_numbers<[1], [0], [0], [1], [0, 0, 1, 1], [], []>} : vector<1x64xf32>, vector<64x64xf32>, vector<1x64xf32> -> vector<1x64xf32>
    %c15 = arith.constant 15 : index
    %c0_49 = arith.constant 0 : index
    %48 = vector.load %arg12[%c15, %c0_49] : memref<16x64xf32, #tpu.memory_space<vmem>>, vector<1x64xf32>
    tpu.vector_store %arg12[%c15, %c0_49], %47 {strides = array<i32>} : memref<16x64xf32, #tpu.memory_space<vmem>>, vector<1x64xf32>,
    %c0_50 = arith.constant 0 : index
    %c0_51 = arith.constant 0 : index
    %49 = vector.load %arg12[%c0_50, %c0_51] : memref<16x64xf32, #tpu.memory_space<vmem>>, vector<16x64xf32>
    %c0_52 = arith.constant 0 : index
    %c0_53 = arith.constant 0 : index
    %50 = vector.load %arg3[%c0_52, %c0_53] : memref<16x64xf32, #tpu.memory_space<vmem>>, vector<16x64xf32>
    %51 = arith.addf %49, %50 : vector<16x64xf32>
    %c0_54 = arith.constant 0 : index
    %c0_55 = arith.constant 0 : index
    %52 = vector.load %arg4[%c0_54, %c0_55] : memref<16x16xf32, #tpu.memory_space<vmem>>, vector<16x16xf32>
    %c0_56 = arith.constant 0 : index
    %c0_57 = arith.constant 0 : index
    %53 = vector.load %arg1[%c0_56, %c0_57] : memref<16x64xf32, #tpu.memory_space<vmem>>, vector<16x64xf32>
    %cst_58 = arith.constant dense<0.000000e+00> : vector<16x64xf32>
    %54 = tpu.matmul %52, %53, %cst_58 {dimension_numbers = #tpu.dot_dimension_numbers<[1], [0], [0], [1], [0, 0, 1, 1], [], []>} : vector<16x16xf32>, vector<16x64xf32>, vector<16x64xf32> -> vector<16x64xf32>
    %c0_59 = arith.constant 0 : index
    %c0_60 = arith.constant 0 : index
    %55 = vector.load %arg4[%c0_59, %c0_60] : memref<16x16xf32, #tpu.memory_space<vmem>>, vector<16x16xf32>
    %cst_61 = arith.constant dense<0.000000e+00> : vector<16x64xf32>
    %56 = tpu.matmul %55, %51, %cst_61 {dimension_numbers = #tpu.dot_dimension_numbers<[1], [0], [0], [1], [0, 0, 1, 1], [], []>} : vector<16x16xf32>, vector<16x64xf32>, vector<16x64xf32> -> vector<16x64xf32>
    %c0_62 = arith.constant 0 : index
    %c0_63 = arith.constant 0 : index
    %57 = vector.load %arg6[%c0_62, %c0_63] : memref<16x16xf32, #tpu.memory_space<vmem>>, vector<16x16xf32>
    %cst_64 = arith.constant dense<0.000000e+00> : vector<16x64xf32>
    %58 = tpu.matmul %57, %56, %cst_64 {dimension_numbers = #tpu.dot_dimension_numbers<[1], [0], [0], [1], [0, 0, 1, 1], [], []>} : vector<16x16xf32>, vector<16x64xf32>, vector<16x64xf32> -> vector<16x64xf32>
    %59 = arith.addf %54, %58 : vector<16x64xf32>
    %c0_65 = arith.constant 0 : index
    %c0_66 = arith.constant 0 : index
    %60 = vector.load %arg7[%c0_65, %c0_66] : memref<16x1xf32, #tpu.memory_space<vmem>>, vector<16x1xf32>
    %61 = vector.broadcast %60 : vector<16x1xf32> to vector<16x64xf32>
    %62 = arith.addf %59, %61 : vector<16x64xf32>
    %c0_67 = arith.constant 0 : index
    %c0_68 = arith.constant 0 : index
    %63 = vector.load %arg8[%c0_67, %c0_68] : memref<32x16xf32, #tpu.memory_space<vmem>>, vector<32x16xf32>
    %cst_69 = arith.constant dense<0.000000e+00> : vector<32x64xf32>
    %64 = tpu.matmul %63, %62, %cst_69 {dimension_numbers = #tpu.dot_dimension_numbers<[1], [0], [0], [1], [0, 0, 1, 1], [], []>} : vector<32x16xf32>, vector<16x64xf32>, vector<32x64xf32> -> vector<32x64xf32>
    %c0_70 = arith.constant 0 : index
    %c0_71 = arith.constant 0 : index
    %65 = vector.load %arg9[%c0_70, %c0_71] : memref<32x1xf32, #tpu.memory_space<vmem>>, vector<32x1xf32>
    %66 = vector.broadcast %65 : vector<32x1xf32> to vector<32x64xf32>
    %67 = arith.addf %64, %66 : vector<32x64xf32>
    %68 = vector.extract_strided_slice %67 {offsets = [0, 0], sizes = [16, 64], strides = [1, 1]} : vector<32x64xf32> to vector<16x64xf32>
    %69 = vector.extract_strided_slice %67 {offsets = [16, 0], sizes = [16, 64], strides = [1, 1]} : vector<32x64xf32> to vector<16x64xf32>
    %70 = math.tanh %68 : vector<16x64xf32>
    %cst_72 = arith.constant 1.000000e-01 : f32
    %71 = vector.broadcast %cst_72 : f32 to vector<16x64xf32>
    %72 = arith.mulf %71, %70 : vector<16x64xf32>
    %73 = math.exp %72 : vector<16x64xf32>
    %74 = arith.mulf %56, %73 : vector<16x64xf32>
    %75 = arith.addf %74, %69 : vector<16x64xf32>
    %c0_73 = arith.constant 0 : index
    %c0_74 = arith.constant 0 : index
    %76 = vector.load %arg5[%c0_73, %c0_74] : memref<16x16xf32, #tpu.memory_space<vmem>>, vector<16x16xf32>
    %cst_75 = arith.constant dense<0.000000e+00> : vector<16x64xf32>
    %77 = tpu.matmul %76, %62, %cst_75 {dimension_numbers = #tpu.dot_dimension_numbers<[1], [0], [0], [1], [0, 0, 1, 1], [], []>} : vector<16x16xf32>, vector<16x64xf32>, vector<16x64xf32> -> vector<16x64xf32>
    %c0_76 = arith.constant 0 : index
    %c0_77 = arith.constant 0 : index
    %78 = vector.load %arg10[%c0_76, %c0_77] : memref<16x64xf32, #tpu.memory_space<vmem>>, vector<16x64xf32>
    tpu.vector_store %arg10[%c0_76, %c0_77], %77 {strides = array<i32>} : memref<16x64xf32, #tpu.memory_space<vmem>>, vector<16x64xf32>,
    %c0_78 = arith.constant 0 : index
    %c0_79 = arith.constant 0 : index
    %79 = vector.load %arg11[%c0_78, %c0_79] : memref<16x64xf32, #tpu.memory_space<vmem>>, vector<16x64xf32>
    tpu.vector_store %arg11[%c0_78, %c0_79], %75 {strides = array<i32>} : memref<16x64xf32, #tpu.memory_space<vmem>>, vector<16x64xf32>,
    return
  }
}

</mosaic_0001>

<bundles_post_ra>
// kernel: our_model_forward.1
= control target key start
LH: loop header
LB: loop body
LE: loop exit
PB: predicated region body
PF: predicated region fallthrough
CT: control target
= control target key end

     0   :  { %vm47_vm0 = vcmask 523264   ;;  %s1421_s0 = inlined_call_operand.vmem [shape: f32[1,64], index: 0, kind: input, shape index: {}]   ;;  %s1422_s1 = inlined_call_operand.vmem [shape: f32[16,64], index: 1, kind: input, shape index: {}]   ;;  %s1423_s2 = inlined_call_operand.vmem [shape: f32[1024,64], index: 2, kind: input, shape index: {}]   ;;  %s1424_s3 = inlined_call_operand.vmem [shape: f32[16,64], index: 3, kind: input, shape index: {}]   ;;  %s1425_s4 = inlined_call_operand.vmem [shape: f32[16,16], index: 4, kind: input, shape index: {}]   ;;  %s1426_s5 = inlined_call_operand.vmem [shape: f32[16,16], index: 5, kind: input, shape index: {}]   ;;  %s1427_s6 = inlined_call_operand.vmem [shape: f32[16,16], index: 6, kind: input, shape index: {}]   ;;  %s1428_s7 = inlined_call_operand.vmem [shape: f32[16,1], index: 7, kind: input, shape index: {}]   ;;  %s1429_s8 = inlined_call_operand.vmem [shape: f32[32,16], index: 8, kind: input, shape index: {}]   ;;  %s1430_s9 = inlined_call_operand.vmem [shape: f32[32,1], index: 9, kind: input, shape index: {}]   ;;  %s1431_s10 = inlined_call_operand.vmem [shape: f32[16,64], index: 10, kind: output, shape index: {0}]   ;;  %s1432_s11 = inlined_call_operand.hbm [shape: f32[16,64], index: 11, kind: output, shape index: {1}]  }
   0x1   :  { %v109_v0 = vld [vmem:[%s1423_s2 + $0xb8] sm:$0xff]  ;;  %v108_v2 = vld [vmem:[%s1423_s2 + $0xb0] sm:$0xff]  ;;  %v107_v4 = vld [vmem:[%s1423_s2 + $0xa8] sm:$0xff] }
   0x2   :  { %v138_v1 = vld [vmem:[%s1423_s2 + $0xf8] sm:$0xff]  ;;  %118 = vmatpush.msra.mxu2 %v109_v0  ;;  %v137_v3 = vld [vmem:[%s1423_s2 + $0xf0] sm:$0xff]  ;;  %v136_v5 = vld [vmem:[%s1423_s2 + $0xe8] sm:$0xff] }
   0x3   :  { %147 = vmatpush.msra.mxu3 %v138_v1  ;;  %v46_v6 = vld [vmem:[%s1423_s2 + $0x38] sm:$0xff]  ;;  %v45_v8 = vld [vmem:[%s1423_s2 + $0x30] sm:$0xff]  ;;  %v106_v10 = vld [vmem:[%s1423_s2 + $0xa0] sm:$0xff] }
   0x4   :  { %v80_v7 = vld [vmem:[%s1423_s2 + $0x78] sm:$0xff]  ;;  %119 = vmatpush.msra.mxu2 %v108_v2  ;;  %v79_v9 = vld [vmem:[%s1423_s2 + $0x70] sm:$0xff]  ;;  %59 = vmatpush.msra.mxu0 %v46_v6  ;;  %v135_v11 = vld [vmem:[%s1423_s2 + $0xe0] sm:$0xff] }
   0x5   :  { %148 = vmatpush.msra.mxu3 %v137_v3  ;;  %89 = vmatpush.msra.mxu1 %v80_v7  ;;  %v44_v12 = vld [vmem:[%s1423_s2 + $0x28] sm:$0xff]  ;;  %v105_v14 = vld [vmem:[%s1423_s2 + $0x98] sm:$0xff]  ;;  %v43_v16 = vld [vmem:[%s1423_s2 + $0x20] sm:$0xff] }
   0x6   :  { %120 = vmatpush.msra.mxu2 %v107_v4  ;;  %v78_v13 = vld [vmem:[%s1423_s2 + $0x68] sm:$0xff]  ;;  %60 = vmatpush.msra.mxu0 %v45_v8  ;;  %v134_v15 = vld [vmem:[%s1423_s2 + $0xd8] sm:$0xff]  ;;  %v77_v17 = vld [vmem:[%s1423_s2 + $0x60] sm:$0xff] }
   0x7   :  { %149 = vmatpush.msra.mxu3 %v136_v5  ;;  %90 = vmatpush.msra.mxu1 %v79_v9  ;;  %v104_v18 = vld [vmem:[%s1423_s2 + $0x90] sm:$0xff]  ;;  %v42_v20 = vld [vmem:[%s1423_s2 + $0x18] sm:$0xff]  ;;  %v103_v22 = vld [vmem:[%s1423_s2 + $0x88] sm:$0xff] }
   0x8   :  { %121 = vmatpush.msra.mxu2 %v106_v10  ;;  %61 = vmatpush.msra.mxu0 %v44_v12  ;;  %v133_v19 = vld [vmem:[%s1423_s2 + $0xd0] sm:$0xff]  ;;  %v76_v21 = vld [vmem:[%s1423_s2 + $0x58] sm:$0xff]  ;;  %v132_v23 = vld [vmem:[%s1423_s2 + $0xc8] sm:$0xff] }
   0x9   :  { %150 = vmatpush.msra.mxu3 %v135_v11  ;;  %91 = vmatpush.msra.mxu1 %v78_v13  ;;  %v41_v24 = vld [vmem:[%s1423_s2 + $0x10] sm:$0xff]  ;;  %v102_v26 = vld [vmem:[%s1423_s2 + $0x80] sm:$0xff]  ;;  %v225_v28 = vld [vmem:[%s1423_s2 + $0x1b8] sm:$0xff] }
   0xa   :  { %122 = vmatpush.msra.mxu2 %v105_v14  ;;  %62 = vmatpush.msra.mxu0 %v43_v16  ;;  %v75_v25 = vld [vmem:[%s1423_s2 + $0x50] sm:$0xff]  ;;  %v131_v27 = vld [vmem:[%s1423_s2 + $0xc0] sm:$0xff]  ;;  %v254_v29 = vld [vmem:[%s1423_s2 + $0x1f8] sm:$0xff] }
   0xb   :  { %151 = vmatpush.msra.mxu3 %v134_v15  ;;  %92 = vmatpush.msra.mxu1 %v77_v17  ;;  %v40_v30 = vld [vmem:[%s1423_s2 + $0x8] sm:$0xff]  ;;  %v224_v32 = vld [vmem:[%s1423_s2 + $0x1b0] sm:$0xff]  ;;  %v39_v34 = vld [vmem:[%s1423_s2] sm:$0xff] }
   0xc   :  { %123 = vmatpush.msra.mxu2 %v104_v18  ;;  %63 = vmatpush.msra.mxu0 %v42_v20  ;;  %v74_v31 = vld [vmem:[%s1423_s2 + $0x48] sm:$0xff]  ;;  %v253_v33 = vld [vmem:[%s1423_s2 + $0x1f0] sm:$0xff]  ;;  %v73_v35 = vld [vmem:[%s1423_s2 + $0x40] sm:$0xff] }
   0xd   :  { %152 = vmatpush.msra.mxu3 %v133_v19  ;;  %93 = vmatpush.msra.mxu1 %v76_v21  ;;  %v223_v36 = vld [vmem:[%s1423_s2 + $0x1a8] sm:$0xff]  ;;  %v167_v38 = vld [vmem:[%s1423_s2 + $0x138] sm:$0xff]  ;;  %v222_v40 = vld [vmem:[%s1423_s2 + $0x1a0] sm:$0xff] }
   0xe   :  { %124 = vmatpush.msra.mxu2 %v103_v22  ;;  %64 = vmatpush.msra.mxu0 %v41_v24  ;;  %v252_v37 = vld [vmem:[%s1423_s2 + $0x1e8] sm:$0xff]  ;;  %v196_v39 = vld [vmem:[%s1423_s2 + $0x178] sm:$0xff]  ;;  %v251_v41 = vld [vmem:[%s1423_s2 + $0x1e0] sm:$0xff] }
   0xf   :  { %153 = vmatpush.msra.mxu3 %v132_v23  ;;  %94 = vmatpush.msra.mxu1 %v75_v25  ;;  %v1020_v42 = vld [vmem:[%s1421_s0] sm:$0x1]  ;;  %v166_v43 = vld [vmem:[%s1423_s2 + $0x130] sm:$0xff]  ;;  %v221_v45 = vld [vmem:[%s1423_s2 + $0x198] sm:$0xff] }
  0x10   :  { %125 = vmatpush.msra.mxu2 %v102_v26  ;;  %65 = vmatpush.msra.mxu0 %v40_v30  ;;  %v195_v44 = vld [vmem:[%s1423_s2 + $0x170] sm:$0xff]  ;;  %v250_v46 = vld [vmem:[%s1423_s2 + $0x1d8] sm:$0xff]  ;;  %v165_v47 = vld [vmem:[%s1423_s2 + $0x128] sm:$0xff] }
  0x11   :  { %154 = vmatpush.msra.mxu3 %v131_v27  ;;  %95 = vmatpush.msra.mxu1 %v74_v31  ;;  %v194_v48 = vld [vmem:[%s1423_s2 + $0x168] sm:$0xff]  ;;  %v220_v49 = vld [vmem:[%s1423_s2 + $0x190] sm:$0xff]  ;;  %v164_v51 = vld [vmem:[%s1423_s2 + $0x120] sm:$0xff] }
  0x12   :  { %234 = vmatpush.msrb.mxu2 %v225_v28  ;;  %66 = vmatpush.msra.mxu0 %v39_v34  ;;  %v249_v50 = vld [vmem:[%s1423_s2 + $0x1d0] sm:$0xff]  ;;  %v193_v52 = vld [vmem:[%s1423_s2 + $0x160] sm:$0xff]  ;;  %v219_v53 = vld [vmem:[%s1423_s2 + $0x188] sm:$0xff] }
  0x13   :  { %263 = vmatpush.msrb.mxu3 %v254_v29  ;;  %96 = vmatpush.msra.mxu1 %v73_v35  ;;  %v248_v54 = vld [vmem:[%s1423_s2 + $0x1c8] sm:$0xff]  ;;  %v163_v55 = vld [vmem:[%s1423_s2 + $0x118] sm:$0xff]  ;;  %v218_v57 = vld [vmem:[%s1423_s2 + $0x180] sm:$0xff] }
  0x14   :  { %235 = vmatpush.msrb.mxu2 %v224_v32  ;;  %176 = vmatpush.msrb.mxu0 %v167_v38  ;;  %v192_v56 = vld [vmem:[%s1423_s2 + $0x158] sm:$0xff]  ;;  %v247_v58 = vld [vmem:[%s1423_s2 + $0x1c0] sm:$0xff]  ;;  %v162_v61 = vld [vmem:[%s1423_s2 + $0x110] sm:$0xff] }
  0x15   :  { %264 = vmatpush.msrb.mxu3 %v253_v33  ;;  %205 = vmatpush.msrb.mxu1 %v196_v39  ;;  %v341_v59 = vld [vmem:[%s1423_s2 + $0x2b8] sm:$0xff]  ;;  %v191_v62 = vld [vmem:[%s1423_s2 + $0x150] sm:$0xff]  ;;  %v161_v1 = vld [vmem:[%s1423_s2 + $0x108] sm:$0xff] }
  0x16   :  { %236 = vmatpush.msrb.mxu2 %v223_v36  ;;  %757 = vmatmul.msk.f32.vlgmr.msra.gmra.mxu3 %vm47_vm0, %v1020_v42  ;;  %v370_v60 = vld [vmem:[%s1423_s2 + $0x2f8] sm:$0xff]  ;;  %v340_v63 = vld [vmem:[%s1423_s2 + $0x2b0] sm:$0xff]  ;;  %v190_v2 = vld [vmem:[%s1423_s2 + $0x148] sm:$0xff] }
  0x17   :  { %265 = vmatpush.msrb.mxu3 %v252_v37  ;;  %756 = vmatmul.msk.f32.vlgmr.msra.gmra.mxu2 %vm47_vm0, %v1020_v42  ;;  %v369_v0 = vld [vmem:[%s1423_s2 + $0x2f0] sm:$0xff]  ;;  %v339_v3 = vld [vmem:[%s1423_s2 + $0x2a8] sm:$0xff]  ;;  %v160_v5 = vld [vmem:[%s1423_s2 + $0x100] sm:$0xff] }
  0x18   :  { %237 = vmatpush.msrb.mxu2 %v222_v40  ;;  %177 = vmatpush.msrb.mxu0 %v166_v43  ;;  %v368_v4 = vld [vmem:[%s1423_s2 + $0x2e8] sm:$0xff]  ;;  %v189_v6 = vld [vmem:[%s1423_s2 + $0x140] sm:$0xff]  ;;  %v283_v7 = vld [vmem:[%s1423_s2 + $0x238] sm:$0xff] }
  0x19   :  { %266 = vmatpush.msrb.mxu3 %v251_v41  ;;  %206 = vmatpush.msrb.mxu1 %v195_v44  ;;  %v312_v8 = vld [vmem:[%s1423_s2 + $0x278] sm:$0xff]  ;;  %v338_v9 = vld [vmem:[%s1423_s2 + $0x2a0] sm:$0xff]  ;;  %v282_v11 = vld [vmem:[%s1423_s2 + $0x230] sm:$0xff] }
  0x1a   :  { %238 = vmatpush.msrb.mxu2 %v221_v45  ;;  %178 = vmatpush.msrb.mxu0 %v165_v47  ;;  %v367_v10 = vld [vmem:[%s1423_s2 + $0x2e0] sm:$0xff]  ;;  %v311_v12 = vld [vmem:[%s1423_s2 + $0x270] sm:$0xff]  ;;  %v337_v13 = vld [vmem:[%s1423_s2 + $0x298] sm:$0xff] }
  0x1b   :  { %267 = vmatpush.msrb.mxu3 %v250_v46  ;;  %207 = vmatpush.msrb.mxu1 %v194_v48  ;;  %v366_v14 = vld [vmem:[%s1423_s2 + $0x2d8] sm:$0xff]  ;;  %v281_v15 = vld [vmem:[%s1423_s2 + $0x228] sm:$0xff]  ;;  %v336_v17 = vld [vmem:[%s1423_s2 + $0x290] sm:$0xff] }
  0x1c   :  { %239 = vmatpush.msrb.mxu2 %v220_v49  ;;  %179 = vmatpush.msrb.mxu0 %v164_v51  ;;  %v310_v16 = vld [vmem:[%s1423_s2 + $0x268] sm:$0xff]  ;;  %v365_v18 = vld [vmem:[%s1423_s2 + $0x2d0] sm:$0xff] }
  0x1d   :  { %268 = vmatpush.msrb.mxu3 %v249_v50  ;;  %208 = vmatpush.msrb.mxu1 %v193_v52 }
  0x1e   :  { %240 = vmatpush.msrb.mxu2 %v219_v53  ;;  %754 = vmatmul.msk.f32.vlgmr.msra.gmra.mxu0 %vm47_vm0, %v1020_v42 }
  0x1f   :  { %269 = vmatpush.msrb.mxu3 %v248_v54  ;;  %755 = vmatmul.msk.f32.vlgmr.msra.gmra.mxu1 %vm47_vm0, %v1020_v42 }
  0x20   :  { %180 = vmatpush.msrb.mxu0 %v163_v55  ;;  %209 = vmatpush.msrb.mxu1 %v192_v56 }
  0x21   :  { %241 = vmatpush.msrb.mxu2 %v218_v57  ;;  %270 = vmatpush.msrb.mxu3 %v247_v58 }
  0x22   :  { %760 = vmatmul.msk.f32.vlgmr.msrb.gmra.mxu2 %vm47_vm0, %v1020_v42  ;;  %761 = vmatmul.msk.f32.vlgmr.msrb.gmra.mxu3 %vm47_vm0, %v1020_v42 }
  0x23   :  { %350 = vmatpush.msra.mxu2 %v341_v59  ;;  %379 = vmatpush.msra.mxu3 %v370_v60 }
  0x24   :  { %181 = vmatpush.msrb.mxu0 %v162_v61  ;;  %210 = vmatpush.msrb.mxu1 %v191_v62 }
  0x25   :  { %351 = vmatpush.msra.mxu2 %v340_v63  ;;  %380 = vmatpush.msra.mxu3 %v369_v0 }
  0x26   :  { %182 = vmatpush.msrb.mxu0 %v161_v1  ;;  %211 = vmatpush.msrb.mxu1 %v190_v2 }
  0x27   :  { %352 = vmatpush.msra.mxu2 %v339_v3  ;;  %381 = vmatpush.msra.mxu3 %v368_v4 }
  0x28   :  { %183 = vmatpush.msrb.mxu0 %v160_v5  ;;  %212 = vmatpush.msrb.mxu1 %v189_v6 }
  0x29   :  { %758 = vmatmul.msk.f32.vlgmr.msrb.gmra.mxu0 %vm47_vm0, %v1020_v42  ;;  %759 = vmatmul.msk.f32.vlgmr.msrb.gmra.mxu1 %vm47_vm0, %v1020_v42 }
  0x2a   :  { %292 = vmatpush.msra.mxu0 %v283_v7  ;;  %321 = vmatpush.msra.mxu1 %v312_v8 }
  0x2b   :  { %353 = vmatpush.msra.mxu2 %v338_v9  ;;  %382 = vmatpush.msra.mxu3 %v367_v10 }
  0x2c   :  { %293 = vmatpush.msra.mxu0 %v282_v11  ;;  %322 = vmatpush.msra.mxu1 %v311_v12 }
  0x2d   :  { %17 = vsyncpa [#allocation4], 0  ;;  %354 = vmatpush.msra.mxu2 %v337_v13  ;;  %383 = vmatpush.msra.mxu3 %v366_v14  ;;  %v280_v19 = vld [vmem:[%s1423_s2 + $0x220] sm:$0xff]  ;;  %v335_v21 = vld [vmem:[%s1423_s2 + $0x288] sm:$0xff]  ;;  %vm71_vm1 = vcmask 516096   ;;  %vm518_vm2 = vcmask 130048  }
  0x2e   :  { %v309_v20 = vld [vmem:[%s1423_s2 + $0x260] sm:$0xff]  ;;  %294 = vmatpush.msra.mxu0 %v281_v15  ;;  %323 = vmatpush.msra.mxu1 %v310_v16  ;;  %v364_v22 = vld [vmem:[%s1423_s2 + $0x2c8] sm:$0xff]  ;;  %v279_v23 = vld [vmem:[%s1423_s2 + $0x218] sm:$0xff]  ;;  %s828_s30 = smov [#allocation3]   ;;  %s740_s0 = sshll.u32 %s1432_s11, 4  ;;  %s741_s0 = int_to_ptr.hbm [resolvable:$true] %s740_s0 }
  0x2f   :  { %355 = vmatpush.msra.mxu2 %v336_v17  ;;  %384 = vmatpush.msra.mxu3 %v365_v18  ;;  %v308_v24 = vld [vmem:[%s1423_s2 + $0x258] sm:$0xff]  ;;  %v334_v25 = vld [vmem:[%s1423_s2 + $0x280] sm:$0xff]  ;;  %v278_v29 = vld [vmem:[%s1423_s2 + $0x210] sm:$0xff]  ;;  %s738_s12 = sshll.u32 %s828_s30, 4  ;;  %s739_s12 = int_to_ptr.vmem [resolvable:$true] %s738_s12 }
  0x30   :  { %295 = vmatpush.msra.mxu0 %v280_v19  ;;  %324 = vmatpush.msra.mxu1 %v309_v20  ;;  %v363_v26 = vld [vmem:[%s1423_s2 + $0x2c0] sm:$0xff]  ;;  %v457_v27 = vld [vmem:[%s1423_s2 + $0x3b8] sm:$0xff]  ;;  %v307_v30 = vld [vmem:[%s1423_s2 + $0x250] sm:$0xff] }
  0x31   :  { %356 = vmatpush.msra.mxu2 %v335_v21  ;;  %385 = vmatpush.msra.mxu3 %v364_v22  ;;  %v486_v28 = vld [vmem:[%s1423_s2 + $0x3f8] sm:$0xff]  ;;  %v456_v31 = vld [vmem:[%s1423_s2 + $0x3b0] sm:$0xff]  ;;  %v277_v33 = vld [vmem:[%s1423_s2 + $0x208] sm:$0xff] }
  0x32   :  { %296 = vmatpush.msra.mxu0 %v279_v23  ;;  %325 = vmatpush.msra.mxu1 %v308_v24  ;;  %v485_v32 = vld [vmem:[%s1423_s2 + $0x3f0] sm:$0xff]  ;;  %v306_v34 = vld [vmem:[%s1423_s2 + $0x248] sm:$0xff]  ;;  %v276_v37 = vld [vmem:[%s1423_s2 + $0x200] sm:$0xff] }
  0x33   :  { %357 = vmatpush.msra.mxu2 %v334_v25  ;;  %386 = vmatpush.msra.mxu3 %v363_v26  ;;  %v455_v35 = vld [vmem:[%s1423_s2 + $0x3a8] sm:$0xff]  ;;  %v305_v38 = vld [vmem:[%s1423_s2 + $0x240] sm:$0xff]  ;;  %v399_v39 = vld [vmem:[%s1423_s2 + $0x338] sm:$0xff] }
  0x34   :  { %297 = vmatpush.msra.mxu0 %v278_v29  ;;  %326 = vmatpush.msra.mxu1 %v307_v30  ;;  %v484_v36 = vld [vmem:[%s1423_s2 + $0x3e8] sm:$0xff]  ;;  %v428_v40 = vld [vmem:[%s1423_s2 + $0x378] sm:$0xff]  ;;  %v454_v41 = vld [vmem:[%s1423_s2 + $0x3a0] sm:$0xff] }
  0x35   :  { %466 = vmatpush.msrb.mxu2 %v457_v27  ;;  %495 = vmatpush.msrb.mxu3 %v486_v28  ;;  %v483_v43 = vld [vmem:[%s1423_s2 + $0x3e0] sm:$0xff]  ;;  %v398_v44 = vld [vmem:[%s1423_s2 + $0x330] sm:$0xff]  ;;  %v453_v46 = vld [vmem:[%s1423_s2 + $0x398] sm:$0xff]  ;;  %v827_v28 = vmov 0  }
  0x36   :  { %298 = vmatpush.msra.mxu0 %v277_v33  ;;  %327 = vmatpush.msra.mxu1 %v306_v34  ;;  %v427_v45 = vld [vmem:[%s1423_s2 + $0x370] sm:$0xff]  ;;  %v482_v47 = vld [vmem:[%s1423_s2 + $0x3d8] sm:$0xff]  ;;  %v397_v48 = vld [vmem:[%s1423_s2 + $0x328] sm:$0xff] }
  0x37   :  { %467 = vmatpush.msrb.mxu2 %v456_v31  ;;  %496 = vmatpush.msrb.mxu3 %v485_v32  ;;  %v426_v49 = vld [vmem:[%s1423_s2 + $0x368] sm:$0xff]  ;;  %v452_v50 = vld [vmem:[%s1423_s2 + $0x390] sm:$0xff]  ;;  %v396_v52 = vld [vmem:[%s1423_s2 + $0x320] sm:$0xff] }
  0x38   :  { %299 = vmatpush.msra.mxu0 %v276_v37  ;;  %328 = vmatpush.msra.mxu1 %v305_v38  ;;  %v481_v51 = vld [vmem:[%s1423_s2 + $0x3d0] sm:$0xff]  ;;  %v425_v53 = vld [vmem:[%s1423_s2 + $0x360] sm:$0xff]  ;;  %v451_v54 = vld [vmem:[%s1423_s2 + $0x388] sm:$0xff] }
  0x39   :  { %468 = vmatpush.msrb.mxu2 %v455_v35  ;;  %497 = vmatpush.msrb.mxu3 %v484_v36  ;;  %v480_v55 = vld [vmem:[%s1423_s2 + $0x3c8] sm:$0xff]  ;;  %v395_v56 = vld [vmem:[%s1423_s2 + $0x318] sm:$0xff]  ;;  %v450_v58 = vld [vmem:[%s1423_s2 + $0x380] sm:$0xff] }
  0x3a   :  { %408 = vmatpush.msrb.mxu0 %v399_v39  ;;  %437 = vmatpush.msrb.mxu1 %v428_v40  ;;  %v424_v57 = vld [vmem:[%s1423_s2 + $0x358] sm:$0xff]  ;;  %v479_v59 = vld [vmem:[%s1423_s2 + $0x3c0] sm:$0xff]  ;;  %v394_v60 = vld [vmem:[%s1423_s2 + $0x310] sm:$0xff] }
  0x3b   :  { %469 = vmatpush.msrb.mxu2 %v454_v41  ;;  %498 = vmatpush.msrb.mxu3 %v483_v43  ;;  %v423_v61 = vld [vmem:[%s1423_s2 + $0x350] sm:$0xff]  ;;  %v393_v62 = vld [vmem:[%s1423_s2 + $0x308] sm:$0xff]  ;;  %v392_v0 = vld [vmem:[%s1423_s2 + $0x300] sm:$0xff] }
  0x3c   :  { %764 = vmatmul.msk.f32.vlgmr.msra.gmra.mxu2 %vm47_vm0, %v1020_v42  ;;  %765 = vmatmul.msk.f32.vlgmr.msra.gmra.mxu3 %vm47_vm0, %v1020_v42  ;;  %v422_v63 = vld [vmem:[%s1423_s2 + $0x348] sm:$0xff]  ;;  %v421_v1 = vld [vmem:[%s1423_s2 + $0x340] sm:$0xff]  ;;  %v622_v39 = vld [vmem:[%s1430_s9 + $0x10] sm:$0xff] }
  0x3d   :  { %409 = vmatpush.msrb.mxu0 %v398_v44  ;;  %438 = vmatpush.msrb.mxu1 %v427_v45  ;;  %v516_v10 = vld [vmem:[%s1422_s1] sm:$0xff]  ;;  %v515_v16 = vld [vmem:[%s1425_s4 + $0x8] sm:$0xff]  ;;  %v623_v41 = vld [vmem:[%s1430_s9 + $0x18] sm:$0xff] }
  0x3e   :  { %470 = vmatpush.msrb.mxu2 %v453_v46  ;;  %499 = vmatpush.msrb.mxu3 %v482_v47  ;;  %v514_v11 = vld [vmem:[%s1425_s4] sm:$0xff]  ;;  %v511_v21 = vld [vmem:[%s1424_s3 + $0x8] sm:$0xff] }
  0x3f   :  { %410 = vmatpush.msrb.mxu0 %v397_v48  ;;  %439 = vmatpush.msrb.mxu1 %v426_v49  ;;  %v510_v24 = vld [vmem:[%s1424_s3] sm:$0xff]  ;;  %v603_v27 = vld [vmem:[%s1428_s7 + $0x8] sm:$0xff] }
  0x40   :  { %471 = vmatpush.msrb.mxu2 %v452_v50  ;;  %500 = vmatpush.msrb.mxu3 %v481_v51  ;;  %v602_v29 = vld [vmem:[%s1428_s7] sm:$0xff]  ;;  %v549_v33 = vld [vmem:[%s1427_s6 + $0x8] sm:$0xff]  ;;  %s830_s7 = smov 8  }
  0x41   :  { %411 = vmatpush.msrb.mxu0 %v396_v52  ;;  %440 = vmatpush.msrb.mxu1 %v425_v53  ;;  %v548_v32 = vld [vmem:[%s1427_s6] sm:$0xff]  ;;  %v621_v35 = vld [vmem:[%s1430_s9 + $0x8] sm:$0xff]  ;;  %v618_v52 = vld [vmem:[%s1429_s8 + $0x10] sm:$0xff] }
  0x42   :  { %472 = vmatpush.msrb.mxu2 %v451_v54  ;;  %501 = vmatpush.msrb.mxu3 %v480_v55  ;;  %v620_v34 = vld [vmem:[%s1430_s9] sm:$0xff]  ;;  %v617_v50 = vld [vmem:[%s1429_s8 + $0x8] sm:$0xff]  ;;  %v619_v54 = vld [vmem:[%s1429_s8 + $0x18] sm:$0xff] }
  0x43   :  { %762 = vmatmul.msk.f32.vlgmr.msra.gmra.mxu0 %vm47_vm0, %v1020_v42  ;;  %763 = vmatmul.msk.f32.vlgmr.msra.gmra.mxu1 %vm47_vm0, %v1020_v42  ;;  %v616_v49 = vld [vmem:[%s1429_s8] sm:$0xff]  ;;  %v698_v53 = vld [vmem:[%s1426_s5 + $0x8] sm:$0xff] }
  0x44   :  { %412 = vmatpush.msrb.mxu0 %v395_v56  ;;  %441 = vmatpush.msrb.mxu1 %v424_v57  ;;  %v697_v51 = vld [vmem:[%s1426_s5] sm:$0xff] }
  0x45   :  { %473 = vmatpush.msrb.mxu2 %v450_v58  ;;  %502 = vmatpush.msrb.mxu3 %v479_v59 }
  0x46   :  { %768 = vmatmul.msk.f32.vlgmr.msrb.gmra.mxu2 %vm47_vm0, %v1020_v42  ;;  %769 = vmatmul.msk.f32.vlgmr.msrb.gmra.mxu3 %vm47_vm0, %v1020_v42 }
  0x47   :  { %413 = vmatpush.msrb.mxu0 %v394_v60  ;;  %442 = vmatpush.msrb.mxu1 %v423_v61 }
  0x48   :  { %790 = vset.pattern.permute.xlu0 %v827_v28  ;;  %791 = vset.pattern.permute.xlu1 %v827_v28 }
  0x49   :  { %414 = vmatpush.msrb.mxu0 %v393_v62  ;;  %443 = vmatpush.msrb.mxu1 %v422_v63 }
  0x4a   :  { %611 = vperm.xlu0 %790, %v603_v27   ;;  %792 = vset.pattern.permute.xlu2 %v827_v28 }
  0x4b   :  { %415 = vmatpush.msrb.mxu0 %v392_v0  ;;  %444 = vmatpush.msrb.mxu1 %v421_v1 }
  0x4c   :  { %766 = vmatmul.msk.f32.vlgmr.msrb.gmra.mxu0 %vm47_vm0, %v1020_v42  ;;  %767 = vmatmul.msk.f32.vlgmr.msrb.gmra.mxu1 %vm47_vm0, %v1020_v42  ;;  %v517_v42 = vld [vmem:[%s1422_s1 + $0x8] sm:$0xff] }
  0x4d   :  { %593 = vmatpush.msra.mxu2 %v517_v42  ;;  %626 = vperm.xlu1 %791, %v620_v34  }
  0x4e   :  { %636 = vperm.xlu2 %792, %v622_v39  }
  0x4f   :  { %594 = vmatpush.msra.mxu2 %v516_v10 }
  0x50   :  { %774 = vmatmul.msk.f32.vlgmr.msra.gmra.mxu2 %vm518_vm2, %v514_v11 }
  0x52   :  { %606 = vperm.xlu0 %790, %v602_v29  }
  0x55   :  { %631 = vperm.xlu1 %791, %v621_v35  }
  0x56   :  { %641 = vperm.xlu2 %792, %v623_v41  }
  0x58   :  { %775 = vmatmul.msk.f32.gmra.mxu2 %vm518_vm2, %v515_v16 }
  0x99   :  { %v156_v3 = vpop.f32.mrf.mxu3 }
  0x9a   :  { %v127_v2 = vpop.f32.mrf.mxu2  ;;  %159 = vst.msk [vmem:[#allocation2 + $0x3] sm:$0x1] %vm71_vm1, %v156_v3 }
  0x9b   :  { %v68_v4 = vpop.f32.mrf.mxu0  ;;  %130 = vst.msk [vmem:[#allocation2 + $0x2] sm:$0x1] %vm71_vm1, %v127_v2 }
  0x9c   :  { %v98_v5 = vpop.f32.mrf.mxu1  ;;  %72 = vst.msk [vmem:[#allocation2] sm:$0x1] %vm71_vm1, %v68_v4 }
  0x9d   :  { %101 = vst.msk [vmem:[#allocation2 + $0x1] sm:$0x1] %vm71_vm1, %v98_v5 }
  0xa5   :  { %v243_v6 = vpop.f32.mrf.mxu2  ;;  %v272_v7 = vpop.f32.mrf.mxu3 }
  0xa6   :  { %v185_v8 = vpop.f32.mrf.mxu0  ;;  %v214_v9 = vpop.f32.mrf.mxu1  ;;  %246 = vst.msk [vmem:[#allocation2 + $0x6] sm:$0x1] %vm71_vm1, %v243_v6 }
  0xa7   :  { %188 = vst.msk [vmem:[#allocation2 + $0x4] sm:$0x1] %vm71_vm1, %v185_v8 }
  0xa8   :  { %217 = vst.msk [vmem:[#allocation2 + $0x5] sm:$0x1] %vm71_vm1, %v214_v9  ;;  %v637_v4 = vpop.permute.xlu2 %636 }
  0xa9   :  { %275 = vst.msk [vmem:[#allocation2 + $0x7] sm:$0x1] %vm71_vm1, %v272_v7 }
  0xb0   :  { %v508_v23 = vld [vmem:[#allocation2] sm:$0xff] }
  0xb1   :  { %v512_v26 = vadd.f32 %v510_v24, %v508_v23 }
  0xbc   :  { %v612_v37 = vpop.permute.xlu0 %611 }
  0xbf   :  { %v359_v12 = vpop.f32.mrf.mxu2  ;;  %v388_v13 = vpop.f32.mrf.mxu3 }
  0xc0   :  { %v301_v14 = vpop.f32.mrf.mxu0  ;;  %v330_v15 = vpop.f32.mrf.mxu1  ;;  %362 = vst.msk [vmem:[#allocation2 + $0xa] sm:$0x1] %vm71_vm1, %v359_v12 }
  0xc1   :  { %304 = vst.msk [vmem:[#allocation2 + $0x8] sm:$0x1] %vm71_vm1, %v301_v14  ;;  %v627_v55 = vpop.permute.xlu1 %626 }
  0xc2   :  { %333 = vst.msk [vmem:[#allocation2 + $0x9] sm:$0x1] %vm71_vm1, %v330_v15 }
  0xc3   :  { %391 = vst.msk [vmem:[#allocation2 + $0xb] sm:$0x1] %vm71_vm1, %v388_v13 }
  0xc4   :  { %v607_v46 = vpop.permute.xlu0 %606 }
  0xc9   :  { %v417_v17 = vpop.f32.mrf.mxu0  ;;  %v446_v18 = vpop.f32.mrf.mxu1 }
  0xca   :  { %420 = vst.msk [vmem:[#allocation2 + $0xc] sm:$0x1] %vm71_vm1, %v417_v17  ;;  %v475_v19 = vpop.f32.mrf.mxu2  ;;  %v504_v20 = vpop.f32.mrf.mxu3 }
  0xcb   :  { %449 = vst.msk [vmem:[#allocation2 + $0xd] sm:$0x1] %vm71_vm1, %v446_v18  ;;  %v632_v58 = vpop.permute.xlu1 %631 }
  0xcc   :  { %478 = vst.msk [vmem:[#allocation2 + $0xe] sm:$0x1] %vm71_vm1, %v475_v19 }
  0xcd   :  { %507 = vst.msk [vmem:[#allocation2 + $0xf] sm:$0x1] %vm71_vm1, %v504_v20 }
  0xd3   :  { %v596_v36 = vpop.f32.mrf.mxu2 }
  0xd4   :  { %v509_v22 = vld [vmem:[#allocation2 + $0x8] sm:$0xff] }
  0xd5   :  { %v513_v25 = vadd.f32 %v511_v21, %v509_v22 }
  0xd7   :  { %539 = vmatpush.msra.mxu0 %v513_v25  ;;  %782 = vmatpush.msra.mxu1 %v513_v25 }
  0xd9   :  { %540 = vmatpush.msra.mxu0 %v512_v26  ;;  %783 = vmatpush.msra.mxu1 %v512_v26 }
  0xda   :  { %771 = vmatmul.msk.f32.vlgmr.msra.gmra.mxu1 %vm518_vm2, %v515_v16  ;;  %770 = vmatmul.msk.f32.vlgmr.msra.gmra.mxu0 %vm518_vm2, %v514_v11  ;;  %v642_v11 = vpop.permute.xlu2 %641 }
  0xdb   :  { %v599_v40 = vpop.f32.mrf.mxu2 }
 0x157   :  { %v1356_v30 = vpop.f32.mrf.mxu1  ;;  %v1358_v31 = vpop.f32.mrf.mxu0 }
 0x158   :  { %570 = vmatpush.msrb.mxu1 %v1356_v30 }
 0x15a   :  { %571 = vmatpush.msrb.mxu1 %v1358_v31 }
 0x15b   :  { %772 = vmatmul.msk.f32.vlgmr.msrb.gmra.mxu1 %vm518_vm2, %v548_v32 }
 0x163   :  { %773 = vmatmul.msk.f32.gmra.mxu1 %vm518_vm2, %v549_v33 }
 0x1d8   :  { %v573_v38 = vpop.f32.mrf.mxu1 }
 0x1d9   :  { %v597_v44 = vadd.f32 %v596_v36, %v573_v38 }
 0x1db   :  { %v614_v48 = vadd.f32 %v607_v46, %v597_v44 }
 0x1e0   :  { %v576_v43 = vpop.f32.mrf.mxu1 }
 0x1e1   :  { %v600_v45 = vadd.f32 %v599_v40, %v576_v43 }
 0x1e3   :  { %v615_v47 = vadd.f32 %v612_v37, %v600_v45 }
 0x1e5   :  { %670 = vmatpush.msrb.mxu2 %v615_v47  ;;  %784 = vmatpush.msra.mxu3 %v615_v47 }
 0x1e6   :  { %719 = vmatpush.msrb.mxu0 %v615_v47 }
 0x1e7   :  { %671 = vmatpush.msrb.mxu2 %v614_v48  ;;  %785 = vmatpush.msra.mxu3 %v614_v48 }
 0x1e8   :  { %720 = vmatpush.msrb.mxu0 %v614_v48  ;;  %776 = vmatmul.msk.f32.vlgmr.msrb.gmra.mxu2 %vm518_vm2, %v616_v49 }
 0x1e9   :  { %777 = vmatmul.msk.f32.vlgmr.msra.gmra.mxu3 %vm518_vm2, %v617_v50  ;;  %780 = vmatmul.msk.f32.vlgmr.msrb.gmra.mxu0 %vm518_vm2, %v697_v51 }
 0x1f1   :  { %778 = vmatmul.msk.f32.gmra.mxu3 %vm518_vm2, %v618_v52  ;;  %781 = vmatmul.msk.f32.gmra.mxu0 %vm518_vm2, %v698_v53 }
 0x1f9   :  { %779 = vmatmul.msk.f32.gmra.mxu3 %vm518_vm2, %v619_v54 }
 0x266   :  { %v722_v56 = vpop.f32.mrf.mxu0 }
 0x267   :  { %728 = vst.msk [vmem:[%s1431_s10] sm:$0xff] %vm47_vm0, %v722_v56 }
 0x26b   :  { %v673_v57 = vpop.f32.mrf.mxu2 }
 0x26c   :  { %v674_v59 = vadd.f32 %v673_v57, %v627_v55  ;;  %v676_v60 = vpop.f32.mrf.mxu3 }
 0x26d   :  { %v677_v61 = vadd.f32 %v676_v60, %v632_v58 }
 0x26e   :  { %793 = vtanh.f32 %v674_v59  ;;  %v725_v62 = vpop.f32.mrf.mxu0 }
 0x26f   :  { %795 = vtanh.f32 %v677_v61  ;;  %729 = vst.msk [vmem:[%s1431_s10 + $0x8] sm:$0xff] %vm47_vm0, %v725_v62  ;;  %s829_s10 = smov 128  }
 0x274   :  { %v794_v63 = vpop.eup %793  ;;  %v679_v0 = vpop.f32.mrf.mxu3 }
 0x275   :  { %v796_v1 = vpop.eup %795  ;;  %v687_v2 = vmul.f32 0.1, %v794_v63  ;;  %v680_v42 = vadd.f32 %v679_v0, %v637_v4 }
 0x276   :  { %v688_v3 = vmul.f32 0.1, %v796_v1 }
 0x277   :  { %v689_v5 = vmul.f32 1.442695, %v687_v2 }
 0x278   :  { %v691_v6 = vmul.f32 1.442695, %v688_v3 }
 0x279   :  { %797 = vpow2.f32 %v689_v5 }
 0x27a   :  { %799 = vpow2.f32 %v691_v6 }
 0x27c   :  { %v682_v7 = vpop.f32.mrf.mxu3 }
 0x27d   :  { %v683_v12 = vadd.f32 %v682_v7, %v642_v11 }
 0x27f   :  { %v798_v8 = vpop.eup %797 }
 0x280   :  { %v800_v9 = vpop.eup %799  ;;  %v693_v10 = vmul.f32 %v798_v8, %v1358_v31 }
 0x281   :  { %v694_v13 = vmul.f32 %v800_v9, %v1356_v30 }
 0x282   :  { %v695_v14 = vadd.f32 %v693_v10, %v680_v42 }
 0x283   :  { %v696_v15 = vadd.f32 %v694_v13, %v683_v12 }
 0x284   :  { %730 = vst.msk [vmem:[#allocation3] sm:$0xff] %vm47_vm0, %v695_v14 }
 0x285   :  { %731 = vst.msk [vmem:[#allocation3 + $0x8] sm:$0xff] %vm47_vm0, %v696_v15 }
 0x286   :  { %746 = dma.vmem_to_hbm [thread:$0]  %s739_s12, 256, %s741_s0, [#allocation4], %s829_s10, %s829_s10, %s830_s7  }
 0x287   :  { %825 = dma.done.wait [#allocation4], 256  }
 0x288   :  { %826 = vsyncadd [#allocation4], 4294967040 }
 0x289   :  { %753 = vsyncpa [#allocation4], 1 }

</bundles_post_ra>
